<compile_context>
chip_gen: v5e
topology: v5e:2x2
jax: 0.10.0
libtpu: 0.0.40
codegen_flags: <defaults>
</compile_context>

<pallas_src>
import functools

import jax
import jax.numpy as jnp
from jax.experimental import pallas as pl
from jax.experimental.pallas import tpu as pltpu


def _causal_conv1d_kernel(x_ref, w_ref, b_ref, o_ref, win_ref, *,
                          K, tT, dilation, pad_len, Bb):
    """One (batch-block, time-tile) grid step.

    x_ref:   (Bb, C_in, tT)         input tile, channels on sublanes, time on lanes
    w_ref:   (K, C_out, C_in)       per-tap weights (resident, constant block)
    b_ref:   (C_out, 1)             bias, pre-cast to f32 in the wrapper
    o_ref:   (Bb, C_out, tT)        output tile (lane-dense -> unmasked vst)
    win_ref: (Bb, C_in, pad_len+tT) persistent causal window: [halo | current tile]

    Correctness of the halo carry relies on: batch axis outer / time axis
    innermost, time axis marked "arbitrary" (sequential), and tT >= pad_len.
    """
    bias = b_ref[...]                                       # (C_out, 1) f32

    if pad_len > 0:
        # Zero the causal history at the first time tile of every batch block.
        @pl.when(pl.program_id(1) == 0)
        def _():
            win_ref[:, :, :pad_len] = jnp.zeros(
                (win_ref.shape[0], win_ref.shape[1], pad_len), win_ref.dtype)

        # Place the current tile right after the carried halo.
        win_ref[:, :, pad_len:] = x_ref[...]

    for b in range(Bb):                      # unrolled: Bb is a small static int
        acc = bias                                           # (C_out, 1) f32
        for j in range(K):                                   # unrolled taps
            if pad_len > 0:
                xs = win_ref[b, :, j * dilation:j * dilation + tT]   # (C_in, tT)
            else:
                xs = x_ref[b]                                        # pointwise conv
            acc = acc + jnp.dot(w_ref[j], xs,
                                preferred_element_type=jnp.float32)
        o_ref[b] = acc.astype(o_ref.dtype)

    if pad_len > 0:
        # Carry the last pad_len input columns as the next tile's halo.
        # (Disjoint regions because tT >= pad_len; asserted in the wrapper.)
        tail = win_ref[:, :, tT:tT + pad_len]
        win_ref[:, :, :pad_len] = tail


def _vmem_limit_bytes():
    """Per-generation VMEM request with ~25% headroom for compiler scratch /
    pipelining buffers: ~48 MiB on v7x (64 MiB phys), ~96 MiB on v5e/v6e."""
    phys = 64 * 1024 * 1024          # conservative fallback (v7x-sized)
    try:
        phys = int(pltpu.get_tpu_info().vmem_capacity_bytes)
    except Exception:
        pass
    return (phys * 3) // 4


def _largest_divisor_at_most(n, cap):
    for d in range(max(1, min(n, cap)), 0, -1):
        if n % d == 0:
            return d
    return 1


def _pick_batch_tile(B, C_in, dtype_bytes):
    """Fold batch rows into a grid step when C_in under-fills the sublane axis
    (8 rows/vreg f32, 16 bf16), but keep >= 2 batch blocks when B >= 2 so the
    'parallel' batch axis can feed both v7x TensorCores."""
    sublanes = 8 * max(1, 4 // max(dtype_bytes, 1))
    target = max(1, sublanes // max(C_in, 1))
    bb = _largest_divisor_at_most(B, target)
    if B >= 2 and B // bb < 2:
        bb = _largest_divisor_at_most(B, max(1, bb // 2))
    return bb


def _pick_time_tile(T, C_in, C_out, Bb, dtype_bytes, pad_len, budget_bytes):
    """Largest lane-aligned time tile whose pipeline working set fits the budget."""
    # Bytes per time column: double-buffered input + output blocks, the
    # persistent window scratch, and the f32 accumulator values.
    per_col = Bb * (3 * C_in * dtype_bytes + 2 * C_out * dtype_bytes + 4 * C_out)
    tt = max(budget_bytes // max(per_col, 1), 1)
    tt = min(tt, 16384)                      # diminishing returns past ~16K lanes
    if tt >= T and T >= pad_len:
        return T                             # whole time axis in a single step
    # Lane-aligned, and large enough to cover the causal receptive field.
    # TODO(synk): support halos spanning multiple previous tiles (pad_len > tT).
    tt = max(tt, 128, pad_len)
    return ((tt + 127) // 128) * 128


def causal_conv1d(x, weight, bias, *, dilation=1, time_tile=None, batch_tile=None):
    """x: (B, C_in, T) NCW (PyTorch layout). weight: (C_out, C_in, K). bias: (C_out,).

    Returns (B, C_out, T), matching CausalConv1D.forward (stride=1, groups=1).
    NCW layout is kept end-to-end (time on lanes -> lane-dense output) and no
    left-padding pass over HBM is done; the causal history is carried in VMEM.
    """
    B, C_in, T = x.shape
    C_out, C_in_w, K = weight.shape
    assert C_in_w == C_in, "groups != 1 not supported"
    pad_len = dilation * (K - 1)
    dtype_bytes = jnp.dtype(x.dtype).itemsize

    vmem_limit = _vmem_limit_bytes()

    Bb = batch_tile if batch_tile is not None else _pick_batch_tile(B, C_in, dtype_bytes)
    assert B % Bb == 0, "batch tile must divide B"

    tT = time_tile if time_tile is not None else _pick_time_tile(
        T, C_in, C_out, Bb, dtype_bytes, pad_len, vmem_limit // 2)
    assert tT >= pad_len, ("time tile must cover the causal receptive field; "
                           "multi-tile halos are a TODO")

    # Ragged time axis: right-pad with zeros (never affects causal outputs at
    # t < T) instead of one giant block; slice the output back afterwards.
    num_t = pl.cdiv(T, tT)
    T_pad = num_t * tT
    x_in = jnp.pad(x, ((0, 0), (0, 0), (0, T_pad - T))) if T_pad != T else x

    # Per-tap weight layout (K, C_out, C_in); bias pre-cast to f32 (hoisted).
    # TODO(synk): optionally cast weights/activations to bf16 (f32 accumulate)
    # to halve HBM/VMEM traffic and double MXU rate on v6e/v7x.
    # TODO(synk): add a C_out grid axis (block 256-1024) for very large output
    # channel counts so the resident weight block stays small on v7x VMEM.
    w_taps = jnp.transpose(weight, (2, 0, 1))
    b2 = bias.reshape(C_out, 1).astype(jnp.float32)

    kernel = functools.partial(_causal_conv1d_kernel, K=K, tT=tT,
                               dilation=dilation, pad_len=pad_len, Bb=Bb)

    win_scratch = (pltpu.VMEM((Bb, C_in, pad_len + tT), x.dtype)
                   if pad_len > 0 else pltpu.VMEM((8, 128), x.dtype))  # unused if K==1

    out = pl.pallas_call(
        kernel,
        out_shape=jax.ShapeDtypeStruct((B, C_out, T_pad), x.dtype),
        grid=(B // Bb, num_t),
        in_specs=[
            pl.BlockSpec((Bb, C_in, tT), lambda b, t: (b, 0, t)),
            pl.BlockSpec((K, C_out, C_in), lambda b, t: (0, 0, 0)),
            pl.BlockSpec((C_out, 1), lambda b, t: (0, 0)),
        ],
        out_specs=pl.BlockSpec((Bb, C_out, tT), lambda b, t: (b, 0, t)),
        scratch_shapes=[win_scratch],
        compiler_params=pltpu.CompilerParams(
            # Time MUST stay innermost and "arbitrary": the VMEM halo carry is
            # only correct with sequential time iteration per batch block.
            dimension_semantics=("parallel", "arbitrary"),
            vmem_limit_bytes=int(vmem_limit),
        ),
    )(x_in, w_taps, b2)

    return out[:, :, :T] if T_pad != T else out


def _reference_causal_conv1d(x, weight, bias, *, dilation=1):
    """Pure-JAX reference: left-only padding == PyTorch pad-both + right-trim."""
    K = weight.shape[-1]
    pad_len = dilation * (K - 1)
    y = jax.lax.conv_general_dilated(
        x, weight,
        window_strides=(1,),
        padding=[(pad_len, 0)],
        rhs_dilation=(dilation,),
        dimension_numbers=("NCH", "OIH", "NCH"),
    )
    return y + bias[None, :, None]


# TODO(synk): the weight_norm=True path (nn.utils.weight_norm reparameterization)
# is not implemented; the module default (weight_norm=False) is what runs here.


if __name__ == "__main__":
    key = jax.random.PRNGKey(0)
    kx, kw, kb = jax.random.split(key, 3)

    # Small shapes consistent with the module: batch=2, in=4, out=8, T=16, k=3.
    B, C_in, C_out, T, K, dil = 2, 4, 8, 16, 3, 1
    x = jax.random.normal(kx, (B, C_in, T), dtype=jnp.float32)
    # init_weights(init_type='normal'): weight ~ N(0, 0.02).
    weight = 0.02 * jax.random.normal(kw, (C_out, C_in, K), dtype=jnp.float32)
    bias = 0.1 * jax.random.normal(kb, (C_out,), dtype=jnp.float32)

    out = jax.block_until_ready(causal_conv1d(x, weight, bias, dilation=dil))
    ref = _reference_causal_conv1d(x, weight, bias, dilation=dil)
    assert out.shape == (B, C_out, T)
    assert jnp.allclose(out, ref, atol=1e-5, rtol=1e-5)

    # Multi time-tile + dilation: exercises the in-kernel halo carry.
    T2, dil2 = 256, 2
    x2 = jax.random.normal(kx, (B, C_in, T2), dtype=jnp.float32)
    out2 = jax.block_until_ready(
        causal_conv1d(x2, weight, bias, dilation=dil2, time_tile=128))
    ref2 = _reference_causal_conv1d(x2, weight, bias, dilation=dil2)
    assert jnp.allclose(out2, ref2, atol=1e-5, rtol=1e-5)

    # Batch folding (Bb=2) + ragged T (right-padded tail) + halo carry.
    B3, T3 = 4, 200
    x3 = jax.random.normal(kx, (B3, C_in, T3), dtype=jnp.float32)
    out3 = jax.block_until_ready(
        causal_conv1d(x3, weight, bias, dilation=dil2, time_tile=128))
    ref3 = _reference_causal_conv1d(x3, weight, bias, dilation=dil2)
    assert out3.shape == (B3, C_out, T3)
    assert jnp.allclose(out3, ref3, atol=1e-5, rtol=1e-5)

    print("KERNEL_OK")
</pallas_src>

<mosaic_0001>
module attributes {stable_mosaic.version = 11 : i64} {
  func.func @_causal_conv1d_kernel(%arg0: i32, %arg1: i32, %arg2: memref<1x4x16xf32, #tpu.memory_space<vmem>>, %arg3: memref<3x8x4xf32, #tpu.memory_space<vmem>>, %arg4: memref<8x1xf32, #tpu.memory_space<vmem>>, %arg5: memref<1x8x16xf32, #tpu.memory_space<vmem>>, %arg6: memref<1x4x18xf32, #tpu.memory_space<vmem>>) attributes {dimension_semantics = [#tpu.dimension_semantics<parallel>, #tpu.dimension_semantics<arbitrary>], iteration_bounds = array<i64: 2, 1>, scalar_prefetch = 0 : i64, scratch_operands = 1 : i64, tpu.core_type = #tpu.core_type<tc>, window_params = [{transform_indices = @transform_0, window_bounds = array<i64: 1, 4, 16>}, {pipeline_mode = #tpu.pipeline_mode<synchronous>, transform_indices = @transform_1, window_bounds = array<i64: 3, 8, 4>}, {pipeline_mode = #tpu.pipeline_mode<synchronous>, transform_indices = @transform_2, window_bounds = array<i64: 8, 1>}, {transform_indices = @transform_3, window_bounds = array<i64: 1, 8, 16>}]} {
    %c0 = arith.constant 0 : index
    %c0_0 = arith.constant 0 : index
    %0 = vector.load %arg4[%c0, %c0_0] : memref<8x1xf32, #tpu.memory_space<vmem>>, vector<8x1xf32>
    %c0_i32 = arith.constant 0 : i32
    %1 = arith.cmpi eq, %arg1, %c0_i32 : i32
    %2 = arith.extui %1 : i1 to i32
    %c0_i32_1 = arith.constant 0 : i32
    %3 = arith.cmpi ne, %2, %c0_i32_1 : i32
    scf.if %3 {
      %cst_34 = arith.constant 0.000000e+00 : f32
      %30 = vector.broadcast %cst_34 : f32 to vector<1x4x2xf32>
      %c0_35 = arith.constant 0 : index
      %c0_36 = arith.constant 0 : index
      %c0_37 = arith.constant 0 : index
      %31 = vector.load %arg6[%c0_35, %c0_36, %c0_37] : memref<1x4x18xf32, #tpu.memory_space<vmem>>, vector<1x4x2xf32>
      tpu.vector_store %arg6[%c0_35, %c0_36, %c0_37], %30 {strides = array<i32>} : memref<1x4x18xf32, #tpu.memory_space<vmem>>, vector<1x4x2xf32>,
    } else {
    }
    %c0_2 = arith.constant 0 : index
    %c0_3 = arith.constant 0 : index
    %c0_4 = arith.constant 0 : index
    %4 = vector.load %arg2[%c0_2, %c0_3, %c0_4] : memref<1x4x16xf32, #tpu.memory_space<vmem>>, vector<1x4x16xf32>
    %c0_5 = arith.constant 0 : index
    %c0_6 = arith.constant 0 : index
    %c2 = arith.constant 2 : index
    %5 = vector.load %arg6[%c0_5, %c0_6, %c2] : memref<1x4x18xf32, #tpu.memory_space<vmem>>, vector<1x4x16xf32>
    tpu.vector_store %arg6[%c0_5, %c0_6, %c2], %4 {strides = array<i32>} : memref<1x4x18xf32, #tpu.memory_space<vmem>>, vector<1x4x16xf32>,
    %c0_7 = arith.constant 0 : index
    %c0_8 = arith.constant 0 : index
    %c0_9 = arith.constant 0 : index
    %6 = vector.load %arg6[%c0_7, %c0_8, %c0_9] : memref<1x4x18xf32, #tpu.memory_space<vmem>>, vector<1x4x16xf32>
    %7 = vector.shape_cast %6 : vector<1x4x16xf32> to vector<4x16xf32>
    %c0_10 = arith.constant 0 : index
    %c0_11 = arith.constant 0 : index
    %c0_12 = arith.constant 0 : index
    %8 = vector.load %arg3[%c0_10, %c0_11, %c0_12] : memref<3x8x4xf32, #tpu.memory_space<vmem>>, vector<1x8x4xf32>
    %9 = vector.shape_cast %8 : vector<1x8x4xf32> to vector<8x4xf32>
    %cst = arith.constant dense<0.000000e+00> : vector<8x16xf32>
    %10 = tpu.matmul %9, %7, %cst {dimension_numbers = #tpu.dot_dimension_numbers<[1], [0], [0], [1], [0, 0, 1, 1], [], []>} : vector<8x4xf32>, vector<4x16xf32>, vector<8x16xf32> -> vector<8x16xf32>
    %11 = vector.broadcast %0 : vector<8x1xf32> to vector<8x16xf32>
    %12 = arith.addf %11, %10 : vector<8x16xf32>
    %c0_13 = arith.constant 0 : index
    %c0_14 = arith.constant 0 : index
    %c1 = arith.constant 1 : index
    %13 = vector.load %arg6[%c0_13, %c0_14, %c1] : memref<1x4x18xf32, #tpu.memory_space<vmem>>, vector<1x4x16xf32>
    %14 = vector.shape_cast %13 : vector<1x4x16xf32> to vector<4x16xf32>
    %c1_15 = arith.constant 1 : index
    %c0_16 = arith.constant 0 : index
    %c0_17 = arith.constant 0 : index
    %15 = vector.load %arg3[%c1_15, %c0_16, %c0_17] : memref<3x8x4xf32, #tpu.memory_space<vmem>>, vector<1x8x4xf32>
    %16 = vector.shape_cast %15 : vector<1x8x4xf32> to vector<8x4xf32>
    %cst_18 = arith.constant dense<0.000000e+00> : vector<8x16xf32>
    %17 = tpu.matmul %16, %14, %cst_18 {dimension_numbers = #tpu.dot_dimension_numbers<[1], [0], [0], [1], [0, 0, 1, 1], [], []>} : vector<8x4xf32>, vector<4x16xf32>, vector<8x16xf32> -> vector<8x16xf32>
    %18 = arith.addf %12, %17 : vector<8x16xf32>
    %c0_19 = arith.constant 0 : index
    %c0_20 = arith.constant 0 : index
    %c2_21 = arith.constant 2 : index
    %19 = vector.load %arg6[%c0_19, %c0_20, %c2_21] : memref<1x4x18xf32, #tpu.memory_space<vmem>>, vector<1x4x16xf32>
    %20 = vector.shape_cast %19 : vector<1x4x16xf32> to vector<4x16xf32>
    %c2_22 = arith.constant 2 : index
    %c0_23 = arith.constant 0 : index
    %c0_24 = arith.constant 0 : index
    %21 = vector.load %arg3[%c2_22, %c0_23, %c0_24] : memref<3x8x4xf32, #tpu.memory_space<vmem>>, vector<1x8x4xf32>
    %22 = vector.shape_cast %21 : vector<1x8x4xf32> to vector<8x4xf32>
    %cst_25 = arith.constant dense<0.000000e+00> : vector<8x16xf32>
    %23 = tpu.matmul %22, %20, %cst_25 {dimension_numbers = #tpu.dot_dimension_numbers<[1], [0], [0], [1], [0, 0, 1, 1], [], []>} : vector<8x4xf32>, vector<4x16xf32>, vector<8x16xf32> -> vector<8x16xf32>
    %24 = arith.addf %18, %23 : vector<8x16xf32>
    %c0_26 = arith.constant 0 : index
    %c0_27 = arith.constant 0 : index
    %c0_28 = arith.constant 0 : index
    %25 = vector.load %arg5[%c0_26, %c0_27, %c0_28] : memref<1x8x16xf32, #tpu.memory_space<vmem>>, vector<1x8x16xf32>
    %26 = vector.shape_cast %25 : vector<1x8x16xf32> to vector<8x16xf32>
    %27 = vector.shape_cast %24 : vector<8x16xf32> to vector<1x8x16xf32>
    tpu.vector_store %arg5[%c0_26, %c0_27, %c0_28], %27 {strides = array<i32>} : memref<1x8x16xf32, #tpu.memory_space<vmem>>, vector<1x8x16xf32>,
    %c0_29 = arith.constant 0 : index
    %c0_30 = arith.constant 0 : index
    %c16 = arith.constant 16 : index
    %28 = vector.load %arg6[%c0_29, %c0_30, %c16] : memref<1x4x18xf32, #tpu.memory_space<vmem>>, vector<1x4x2xf32>
    %c0_31 = arith.constant 0 : index
    %c0_32 = arith.constant 0 : index
    %c0_33 = arith.constant 0 : index
    %29 = vector.load %arg6[%c0_31, %c0_32, %c0_33] : memref<1x4x18xf32, #tpu.memory_space<vmem>>, vector<1x4x2xf32>
    tpu.vector_store %arg6[%c0_31, %c0_32, %c0_33], %28 {strides = array<i32>} : memref<1x4x18xf32, #tpu.memory_space<vmem>>, vector<1x4x2xf32>,
    return
  }
  func.func @transform_0(%arg0: i32, %arg1: i32) -> (i32, i32, i32) {
    %c0_i32 = arith.constant 0 : i32
    %c0_i32_0 = arith.constant 0 : i32
    return %arg0, %c0_i32, %arg1 : i32, i32, i32
  }
  func.func @transform_1(%arg0: i32, %arg1: i32) -> (i32, i32, i32) {
    %c0_i32 = arith.constant 0 : i32
    %c0_i32_0 = arith.constant 0 : i32
    %c0_i32_1 = arith.constant 0 : i32
    %c0_i32_2 = arith.constant 0 : i32
    return %c0_i32, %c0_i32_0, %c0_i32_1 : i32, i32, i32
  }
  func.func @transform_2(%arg0: i32, %arg1: i32) -> (i32, i32) {
    %c0_i32 = arith.constant 0 : i32
    %c0_i32_0 = arith.constant 0 : i32
    %c0_i32_1 = arith.constant 0 : i32
    return %c0_i32, %c0_i32_0 : i32, i32
  }
  func.func @transform_3(%arg0: i32, %arg1: i32) -> (i32, i32, i32) {
    %c0_i32 = arith.constant 0 : i32
    %c0_i32_0 = arith.constant 0 : i32
    return %arg0, %c0_i32, %arg1 : i32, i32, i32
  }
}

</mosaic_0001>

<bundles_post_ra>
// kernel: tpu_custom_call.1
= control target key start
LH: loop header
LB: loop body
LE: loop exit
PB: predicated region body
PF: predicated region fallthrough
CT: control target
= control target key end

     0   :  { %8 = vsyncpa [#allocation4], 0  ;;  %s703_s0 = inlined_call_operand.vmem [shape: f32[2,4,16], index: 0, kind: input, shape index: {}]   ;;  %s704_s1 = inlined_call_operand.vmem [shape: f32[3,8,4], index: 1, kind: input, shape index: {}]   ;;  %s705_s2 = inlined_call_operand.vmem [shape: f32[8,1], index: 2, kind: input, shape index: {}]   ;;  %s706_s3 = inlined_call_operand.hbm [shape: f32[2,8,16], index: 3, kind: output, shape index: {}]  }
   0x1   :  { %10 = vsyncpa [#allocation4 + $0x1], 0  ;;  %s586_s12 = smov 0   ;;  %s588_s13 = smov 0  }
   0x2   :  { %s590_s14 = smov 0   ;;  %s592_s15 = smov 0  }
   0x3   :  { %s594_s16 = smov 0   ;;  %s596_s17 = smov 0  }
   0x4 LB: > { %s398_s18 = sadd.s32 4294967295, %s558_s17   ;;  %s399_s19 = sadd.s32 4294967294, %s558_s17   ;;  %s558_s17 = sphi %s596_s17, %s16_s17   ;;  %s554_s16 = sphi %s594_s16, %s713_s16   ;;  %s550_s15 = sphi %s592_s15, %s712_s15   ;;  %s546_s14 = sphi %s590_s14, %s711_s14   ;;  %s542_s13 = sphi %s588_s13, %s710_s13   ;;  %s538_s12 = sphi %s586_s12, %s709_s12  }
   0x5   : > { %s28_s20 = sadd.s32 1, %s554_s16  ;;  %s107_s21 = sadd.s32 1, %s546_s14 }
   0x6   : > { %p30_p0 = scmp.ge.s32.totalorder %s28_s20, 2  ;;  %p117_p1 = scmp.ne.s32.totalorder %s546_s14, %s542_s13 }
   0x7   : > { %p118_p2 = scmp.eq.s32.totalorder %s398_s18, 1  ;;  %p123_p3 = scmp.ne.s32.totalorder %s542_s13, %s538_s12 }
   0x8   : > { %s715_s20 = smov (%p30_p0, %s28_s20), 0  ;;  %p124_p5 = scmp.eq.s32.totalorder %s399_s19, 1 }
   0x9   : > { %p626_p4 = por %p118_p2, %p117_p1  ;;  %s102_s23 = ssub.s32 %s554_s16, %s715_s20 }
   0xa   : > { %p402_p6 = scmp.ge.s32.totalorder %s558_s17, 1  ;;  %p105_p7 = scmp.eq.s32.totalorder %s102_s23, 0 }
   0xb   : > { %p633_p8 = por %p124_p5, %p123_p3  ;;  %p158_p9 = scmp.lt.s32.totalorder %s558_s17, 3 }
   0xc   : > { %s639_s25 = scalar_select %p105_p7, %s546_s14, %s107_s21  }
   0xd   : > { %p159_p10 = pnand %p402_p6, %p158_p9 }
   0xe   : > { %p184_p11 = scmp.lt.s32.totalorder (!%p159_p10), %s550_s15, 1  ;;  %s561_s4 = smov (!%p159_p10), 2  }
   0xf   : > { %162 = sbr.rel (%p159_p10) target bundleno = 402 (0x192), region = 32  ;;  %s562_s5 = smov (!%p159_p10), 112  }
  0x10   : > { %s563_s6 = smov (!%p159_p10), 127   ;;  %s564_s7 = smov (!%p159_p10), 126  }
  0x11   : > { %s414_s28 = sshll.u32 (!%p159_p10), %s550_s15, 3  ;;  %s500_s18 = scalar_lea.hbm (!%p159_p10), %s706_s3, 16 }
  0x14   : > { %vm196_vm0 = vcmask 11264   ;;  %v560_v0 = vmov 0.0   ;;  %s185_s26 = scalar_select %p184_p11, %s550_s15, 1  ;;  %vm203_vm1 = vcmask 142352   ;;  %vm211_vm2 = vcmask 1043456   ;;  %v206_v5 = vld [vmem:[%s704_s1] sm:$0xff] }
  0x15   : > { %197 = vst.msk [vmem:[#allocation2] sm:$0xf] %vm196_vm0, %v560_v0  ;;  %vm207_vm3 = vcmask 31744   ;;  %v191_v6 = vld [vmem:[%s705_s2] sm:$0xff]  ;;  %v565_v7 = vmov 0   ;;  %v407_v9 = vld [vmem:[%s704_s1 + $0x8] sm:$0xff] }
  0x16   : > { %s404_s27 = sshll.u32 %s185_s26, 2  ;;  %478 = vset.pattern.permute.xlu1 %v565_v7  ;;  %479 = vset.pattern.permute.xlu0 %v565_v7  ;;  %v410_v11 = vld [vmem:[%s704_s1 + $0x10] sm:$0xff]  ;;  %s181_s26 = sand.u32 1, %s542_s13   ;;  %vm301_vm4 = vcmask 130048  }
  0x17   : > { %s190_s30 = scalar_lea.vmem %s703_s0, %s404_s27  ;;  %s403_s27 = sshll.u32 %s181_s26, 3 }
  0x18   : > { %v198_v1 = vld [vmem:[%s190_s30] sm:$0xf]  ;;  %s311_s8 = scalar_lea.sflag [#allocation4], %s181_s26 }
  0x19   : > { %200 = vrot.lane.b32.xlu0 %v198_v1, %s561_s4  ;;  %s322_s4 = scalar_lea.hbm %s706_s3, %s414_s28 }
  0x8b   : > { %v201_v2 = vpop.permute.xlu0 %200 }
  0x8c   : > { %204 = vst.msk [vmem:[#allocation2] sm:$0xf] %vm203_vm1, %v201_v2 }
  0x93   : > { %v303_v3 = vld [vmem:[#allocation2] sm:$0xf] }
  0x94   : > { %v205_v4 = vld [vmem:[#allocation2] sm:$0xf]  ;;  %305 = vrot.lane.b32.xlu2 %v303_v3, %s562_s5  ;;  %s183_s5 = scalar_lea.vmem [#allocation3], %s403_s27 }
  0x95   : > { %243 = vrot.lane.b32.xlu1 %v205_v4, %s563_s6  ;;  %273 = vrot.lane.b32.xlu0 %v205_v4, %s564_s7  ;;  %s324_s6 = sshll.u32 %s183_s5, 4  ;;  %s326_s7 = sshll.u32 %s322_s4, 4  ;;  %s325_s6 = int_to_ptr.vmem [resolvable:$true] %s324_s6  ;;  %s327_s7 = int_to_ptr.hbm [resolvable:$true] %s326_s7 }
  0x96   : > { %405 = vmatpush.msk.msra.mxu0 %vm211_vm2, %v205_v4  ;;  %s494_s9 = sshra.s32 %s327_s7, 4  ;;  %s495_s9 = int_to_ptr.hbm [resolvable:$true] %s494_s9 }
  0x97   : > { %406 = vmatmul.msk.f32.vlgmr.msra.gmra.mxu0 %vm207_vm3, %v206_v5  ;;  %s496_s15 = scalar_lea.hbm %s495_s9, 8  ;;  %p501_p1 = scmp.lt.s32.totalorder %s495_s9, %s706_s3 }
  0x98   : > { %p497_p12 = scmp.ne.s32.totalorder %s495_s9, %s496_s15  ;;  %p502_p2 = scmp.lt.s32.totalorder %s500_s18, %s496_s15 }
  0x9a   : > { %p498_p13 = pnand %p497_p12, %p626_p4  ;;  %p503_p3 = por %p502_p2, %p501_p1 }
  0x9c   : > { %p499_p0 = pneg %p498_p13 }
  0x9d   : > { %237 = vperm.xlu1 %478, %v191_v6  }
  0x9e   : > { %p504_p5 = pnand %p503_p3, %p499_p0 }
  0xee   : > { %v306_v8 = vpop.permute.xlu2 %305 }
  0xef   : > { %309 = vst.msk [vmem:[#allocation2] sm:$0xf] %vm196_vm0, %v306_v8 }
 0x107   : > { %v244_v10 = vpop.permute.xlu1 %243  ;;  %v274_v12 = vpop.permute.xlu0 %273 }
 0x108   : > { %408 = vmatpush.msk.msra.mxu1 %vm211_vm2, %v244_v10  ;;  %411 = vmatpush.msk.msra.mxu2 %vm211_vm2, %v274_v12 }
 0x109   : > { %409 = vmatmul.msk.f32.vlgmr.msra.gmra.mxu1 %vm207_vm3, %v407_v9  ;;  %412 = vmatmul.msk.f32.vlgmr.msra.gmra.mxu2 %vm207_vm3, %v410_v11 }
 0x10f   : > { %v238_v13 = vpop.permute.xlu1 %237 }
 0x114   : > { %v232_v14 = vpop.f32.mrf.mxu0 }
 0x115   : > { %v240_v15 = vadd.f32 %v238_v13, %v232_v14 }
 0x186   : > { %v267_v16 = vpop.f32.mrf.mxu1 }
 0x187   : > { %v270_v17 = vadd.f32 %v267_v16, %v240_v15 }
 0x18c   : > { %v297_v18 = vpop.f32.mrf.mxu2 }
 0x18d   : > { %v300_v19 = vadd.f32 %v297_v18, %v270_v17 }
 0x18f   : > { %302 = vst.msk [vmem:[%s183_s5] sm:$0xff] %vm301_vm4, %v300_v19 }
 0x190   : > { %507 = shalt.err (!%p504_p5)
}
 0x191   : > { %417 = dma.vmem_to_hbm [thread:$0]  (%p626_p4), %s325_s6, 128, %s327_s7, %s311_s8  }
 0x192 PF: > { %p423_p6 = scmp.ge.s32.totalorder %s558_s17, 2  ;;  %s338_s23 = sand.u32 1, %s538_s12  }
 0x193   : > { %s339_s26 = scalar_lea.sflag [#allocation4], %s338_s23 }
 0x194   : > { %p420_p7 = pnand %p423_p6, %p633_p8 }
 0x196   : > { %p421_p9 = pneg %p420_p7 }
 0x198   : > { %533 = dma.done.wait (%p421_p9), %s339_s26, 128  }
 0x199   : > { %535 = vsyncadd (%p421_p9), %s339_s26, 4294967168  ;;  %s16_s17 = sadd.s32 1, %s558_s17   ;;  %s709_s12 = smov %s542_s13 }
 0x19a   : > { %p13_p10 = scmp.ge.s32.totalorder %s16_s17, 4   ;;  %s710_s13 = smov %s546_s14 }
 0x19b   : > { %s711_s14 = smov %s639_s25  ;;  %s712_s15 = smov %s554_s16 }
 0x19c   : > { %s713_s16 = smov %s715_s20  ;;  %15 = sbr.rel (!%p13_p10) target bundleno = 4 (0x4), region = 73 }
 0x1a1   :  { %345 = vsyncpa [#allocation4], 1 }
 0x1a2   :  { %347 = vsyncpa [#allocation4 + $0x1], 1 }

</bundles_post_ra>
